<compile_context>
chip_gen: v5e
topology: v5e:2x2
jax: 0.10.0
libtpu: 0.0.40
codegen_flags: <defaults>
</compile_context>

<pallas_src>
import functools

import jax
import jax.numpy as jnp
from jax import lax
from jax.experimental import pallas as pl
from jax.experimental.pallas import tpu as pltpu

# ----------------------------- config ---------------------------------------
B = 2        # batch
S = 8        # sequence length
D = 32       # d_model
H = 4        # num_heads
DH = 8       # d_kv (per-head dim) == f32 sublane tile
INNER = H * DH
DFF = 64     # d_ff
EPS = 1e-6   # T5 layer_norm_epsilon


# --------------------------- Pallas kernel ----------------------------------
def _rms_norm(x, w):
    # T5LayerNorm: no mean subtraction, no bias.
    var = jnp.mean(x * x, axis=-1, keepdims=True)
    return x * lax.rsqrt(var + EPS) * w


def mta_block_kernel(x_ref, ln1_ref, wqkv_ref, wo_ref, ln2_ref, wi_ref,
                     wo_ff_ref, mask_ref, o_ref, *, batch, seq, n_heads,
                     d_head):
    bs = batch * seq
    inner = n_heads * d_head

    x = x_ref[...]                                    # (B*S, D)
    xn = _rms_norm(x, ln1_ref[...])                   # pre-attention RMSNorm

    # ---- single fused QKV projection over the whole slab (NT form) ----
    # (3*inner, D) x (B*S, D)^T -> (3*inner, B*S); one MXU push.
    qkv_t = lax.dot_general(wqkv_ref[...], xn, (((1,), (1,)), ((), ())),
                            preferred_element_type=jnp.float32)
    # Tile-aligned head split (d_head == 8 == f32 sublane tile): layout-free.
    qkv_t = qkv_t.reshape(3, n_heads, d_head, bs)
    q_t, k_t, v_t = qkv_t[0], qkv_t[1], qkv_t[2]      # (H, DH, B*S) T-form

    # One batched minor-dims swap for Q (XLU; the kernel is MXU-push-latency
    # bound so this is effectively free) keeps every contraction below in the
    # plain NN / NT dot_general forms Mosaic lowers natively.
    q = jnp.swapaxes(q_t, 1, 2)                       # (H, B*S, DH)

    # ---- attention, batch folded into row/col axes ----
    # T5: no 1/sqrt(d_head) scaling of the scores.
    s = jnp.einsum("hqd,hdk->hqk", q, k_t,
                   preferred_element_type=jnp.float32)          # (H, B*S, B*S)
    # Block-diagonal additive mask: folded batch elements never attend across
    # each other (exactly reproduces per-batch softmax numerics).
    s = s + mask_ref[...]
    s = s - jnp.max(s, axis=-1, keepdims=True)
    p = jnp.exp(s)
    # Exact divide (approx reciprocal is too coarse vs the 1e-5 reference check).
    p = p / jnp.sum(p, axis=-1, keepdims=True)

    # Context kept in T-form so heads merge into the sublane axis for free.
    ctx_t = jnp.einsum("hdk,hqk->hdq", v_t, p,
                       preferred_element_type=jnp.float32)      # (H, DH, B*S)

    # Fused output projection over ALL heads: one (B*S, inner) @ (inner, D)
    # matmul against the original, un-reshaped wo.
    ctx = ctx_t.reshape(inner, bs).T                  # (B*S, inner); one 2-D xpose
    attn_out = jnp.dot(ctx, wo_ref[...],
                       preferred_element_type=jnp.float32)      # (B*S, D)
    h1 = x + attn_out                                 # residual, stays in vregs

    # ---------------------- T5LayerFF on the full slab ----------------------
    xn2 = _rms_norm(h1, ln2_ref[...])
    ff = jnp.maximum(
        jnp.dot(xn2, wi_ref[...], preferred_element_type=jnp.float32), 0.0)
    y = jnp.dot(ff, wo_ff_ref[...], preferred_element_type=jnp.float32)
    o_ref[...] = (h1 + y).astype(o_ref.dtype)         # single full-slab store


# ------------------------------ wrappers -------------------------------------
def pack_weights(params):
    """Hoisted weight packing: run ONCE, not on every forward call."""
    return {
        "ln1": params["ln1"],
        "ln2": params["ln2"],
        # q|k|v stacked nn.Linear-style (out_features, in_features); row index
        # within each block is h*DH + dh, matching the reference
        # reshape(B,S,H,DH) head split.
        "wqkv_t": jnp.concatenate(
            [params["wq"].T, params["wk"].T, params["wv"].T], axis=0),
        "wo": params["wo"],          # (INNER, D), used as-is by the fused out-proj
        "wi": params["wi"],
        "wo_ff": params["wo_ff"],
    }


@jax.jit
def mta_block_forward(hidden, packed):
    b, s, d = hidden.shape
    x2 = hidden.reshape(b * s, d)                     # free reshape

    # Block-diagonal mask for the folded-batch attention. Depends only on
    # static shapes -> a compile-time constant under jit.
    bid = jnp.repeat(jnp.arange(b, dtype=jnp.int32), s)            # (b*s,)
    mask = jnp.where(bid[:, None] == bid[None, :], 0.0,
                     -1e30).astype(jnp.float32)                    # (b*s, b*s)

    kern = functools.partial(mta_block_kernel, batch=b, seq=s,
                             n_heads=H, d_head=DH)
    vmem = pl.BlockSpec(memory_space=pltpu.MemorySpace.VMEM)
    out2 = pl.pallas_call(
        kern,
        out_shape=jax.ShapeDtypeStruct((b * s, d), hidden.dtype),
        in_specs=[vmem] * 8,
        out_specs=vmem,
    )(x2, packed["ln1"], packed["wqkv_t"], packed["wo"], packed["ln2"],
      packed["wi"], packed["wo_ff"], mask)
    return out2.reshape(b, s, d)


# ------------------------- pure-JAX reference --------------------------------
def reference_forward(hidden, p):
    def rms(x, w):
        var = jnp.mean(x * x, axis=-1, keepdims=True)
        return x * lax.rsqrt(var + EPS) * w

    xn = rms(hidden, p["ln1"])
    q = xn @ p["wq"]
    k = xn @ p["wk"]
    v = xn @ p["wv"]
    q = q.reshape(B, S, H, DH).transpose(0, 2, 1, 3)
    k = k.reshape(B, S, H, DH).transpose(0, 2, 1, 3)
    v = v.reshape(B, S, H, DH).transpose(0, 2, 1, 3)
    scores = jnp.einsum("bhqd,bhkd->bhqk", q, k)      # no scaling (T5)
    attn = jax.nn.softmax(scores, axis=-1)
    ctx = jnp.einsum("bhqk,bhkd->bhqd", attn, v)
    ctx = ctx.transpose(0, 2, 1, 3).reshape(B, S, INNER)
    hidden = hidden + ctx @ p["wo"]

    xn = rms(hidden, p["ln2"])
    hidden = hidden + jnp.maximum(xn @ p["wi"], 0.0) @ p["wo_ff"]
    return hidden


# ------------------------------- main -----------------------------------------
if __name__ == "__main__":
    key = jax.random.PRNGKey(0)
    keys = jax.random.split(key, 8)

    x = jax.random.normal(keys[0], (B, S, D), dtype=jnp.float32)

    params = {
        # T5LayerNorm weights (ones, as in T5); stored (1, D) for broadcasting
        "ln1": jnp.ones((1, D), jnp.float32),
        "ln2": jnp.ones((1, D), jnp.float32),
        # attention projections (stored transposed: y = x @ W)
        "wq": 0.05 * jax.random.normal(keys[1], (D, INNER), jnp.float32),
        "wk": 0.05 * jax.random.normal(keys[2], (D, INNER), jnp.float32),
        "wv": 0.05 * jax.random.normal(keys[3], (D, INNER), jnp.float32),
        "wo": 0.05 * jax.random.normal(keys[4], (INNER, D), jnp.float32),
        # feed-forward
        "wi": 0.05 * jax.random.normal(keys[5], (D, DFF), jnp.float32),
        "wo_ff": 0.05 * jax.random.normal(keys[6], (DFF, D), jnp.float32),
    }

    packed = pack_weights(params)          # hoisted out of the per-call path
    out = mta_block_forward(x, packed)
    out = jax.block_until_ready(out)

    ref = reference_forward(x, params)
    assert out.shape == (B, S, D)
    assert jnp.allclose(out, ref, atol=2e-5, rtol=2e-5), "mismatch vs reference"

    print("KERNEL_OK")
</pallas_src>

<mosaic_0001>
module attributes {stable_mosaic.version = 11 : i64} {
  func.func @mta_block_kernel(%arg0: memref<16x32xf32, #tpu.memory_space<vmem>>, %arg1: memref<1x32xf32, #tpu.memory_space<vmem>>, %arg2: memref<96x32xf32, #tpu.memory_space<vmem>>, %arg3: memref<32x32xf32, #tpu.memory_space<vmem>>, %arg4: memref<1x32xf32, #tpu.memory_space<vmem>>, %arg5: memref<32x64xf32, #tpu.memory_space<vmem>>, %arg6: memref<64x32xf32, #tpu.memory_space<vmem>>, %arg7: memref<16x16xf32, #tpu.memory_space<vmem>>, %arg8: memref<16x32xf32, #tpu.memory_space<vmem>>) attributes {dimension_semantics = [], scalar_prefetch = 0 : i64, scratch_operands = 0 : i64, tpu.core_type = #tpu.core_type<tc>} {
    %c0 = arith.constant 0 : index
    %c0_0 = arith.constant 0 : index
    %0 = vector.load %arg0[%c0, %c0_0] : memref<16x32xf32, #tpu.memory_space<vmem>>, vector<16x32xf32>
    %c0_1 = arith.constant 0 : index
    %c0_2 = arith.constant 0 : index
    %1 = vector.load %arg1[%c0_1, %c0_2] : memref<1x32xf32, #tpu.memory_space<vmem>>, vector<1x32xf32>
    %2 = arith.mulf %0, %0 : vector<16x32xf32>
    %cst = arith.constant dense<0.000000e+00> : vector<16xf32>
    %3 = vector.multi_reduction <add>, %2, %cst [1] : vector<16x32xf32> to vector<16xf32>
    %4 = vector.shape_cast %3 : vector<16xf32> to vector<16x1xf32>
    %cst_3 = arith.constant 3.200000e+01 : f32
    %5 = vector.broadcast %cst_3 : f32 to vector<16x1xf32>
    %6 = arith.divf %4, %5 : vector<16x1xf32>
    %cst_4 = arith.constant 9.99999997E-7 : f32
    %7 = vector.broadcast %cst_4 : f32 to vector<16x1xf32>
    %8 = arith.addf %6, %7 : vector<16x1xf32>
    %9 = math.rsqrt %8 : vector<16x1xf32>
    %10 = vector.broadcast %9 : vector<16x1xf32> to vector<16x32xf32>
    %11 = arith.mulf %0, %10 : vector<16x32xf32>
    %12 = vector.broadcast %1 : vector<1x32xf32> to vector<16x32xf32>
    %13 = arith.mulf %11, %12 : vector<16x32xf32>
    %c0_5 = arith.constant 0 : index
    %c0_6 = arith.constant 0 : index
    %14 = vector.load %arg2[%c0_5, %c0_6] : memref<96x32xf32, #tpu.memory_space<vmem>>, vector<96x32xf32>
    %cst_7 = arith.constant dense<0.000000e+00> : vector<96x16xf32>
    %15 = tpu.matmul %14, %13, %cst_7 {dimension_numbers = #tpu.dot_dimension_numbers<[1], [1], [0], [0], [0, 0, 1, 0], [], []>} : vector<96x32xf32>, vector<16x32xf32>, vector<96x16xf32> -> vector<96x16xf32>
    %16 = vector.shape_cast %15 : vector<96x16xf32> to vector<3x4x8x16xf32>
    %17 = vector.extract_strided_slice %16 {offsets = [0, 0, 0, 0], sizes = [1, 4, 8, 16], strides = [1, 1, 1, 1]} : vector<3x4x8x16xf32> to vector<1x4x8x16xf32>
    %18 = vector.shape_cast %17 : vector<1x4x8x16xf32> to vector<4x8x16xf32>
    %19 = vector.extract_strided_slice %16 {offsets = [1, 0, 0, 0], sizes = [1, 4, 8, 16], strides = [1, 1, 1, 1]} : vector<3x4x8x16xf32> to vector<1x4x8x16xf32>
    %20 = vector.shape_cast %19 : vector<1x4x8x16xf32> to vector<4x8x16xf32>
    %21 = vector.extract_strided_slice %16 {offsets = [2, 0, 0, 0], sizes = [1, 4, 8, 16], strides = [1, 1, 1, 1]} : vector<3x4x8x16xf32> to vector<1x4x8x16xf32>
    %22 = vector.shape_cast %21 : vector<1x4x8x16xf32> to vector<4x8x16xf32>
    %23 = tpu.transpose %18, [0, 2, 1] : vector<4x8x16xf32> -> vector<4x16x8xf32>
    "tpu.trace_start"() <{level = 10 : i32, message = "hqd,hdk->hqk"}> : () -> ()
    %cst_8 = arith.constant dense<0.000000e+00> : vector<4x16x16xf32>
    %24 = tpu.matmul %23, %20, %cst_8 {dimension_numbers = #tpu.dot_dimension_numbers<[2], [1], [1], [2], [0, 0, 0, 1, 1, 2], [0], [0]>} : vector<4x16x8xf32>, vector<4x8x16xf32>, vector<4x16x16xf32> -> vector<4x16x16xf32>
    "tpu.trace_stop"() : () -> ()
    %c0_9 = arith.constant 0 : index
    %c0_10 = arith.constant 0 : index
    %25 = vector.load %arg7[%c0_9, %c0_10] : memref<16x16xf32, #tpu.memory_space<vmem>>, vector<16x16xf32>
    %26 = vector.shape_cast %25 : vector<16x16xf32> to vector<1x16x16xf32>
    %27 = vector.broadcast %26 : vector<1x16x16xf32> to vector<4x16x16xf32>
    %28 = arith.addf %24, %27 : vector<4x16x16xf32>
    %cst_11 = arith.constant dense<0xFF800000> : vector<4x16xf32>
    %29 = vector.multi_reduction <maximumf>, %28, %cst_11 [2] : vector<4x16x16xf32> to vector<4x16xf32>
    %30 = vector.shape_cast %29 : vector<4x16xf32> to vector<4x16x1xf32>
    %31 = vector.broadcast %30 : vector<4x16x1xf32> to vector<4x16x16xf32>
    %32 = arith.subf %28, %31 : vector<4x16x16xf32>
    %33 = math.exp %32 : vector<4x16x16xf32>
    %cst_12 = arith.constant dense<0.000000e+00> : vector<4x16xf32>
    %34 = vector.multi_reduction <add>, %33, %cst_12 [2] : vector<4x16x16xf32> to vector<4x16xf32>
    %35 = vector.shape_cast %34 : vector<4x16xf32> to vector<4x16x1xf32>
    %36 = vector.broadcast %35 : vector<4x16x1xf32> to vector<4x16x16xf32>
    %37 = arith.divf %33, %36 : vector<4x16x16xf32>
    "tpu.trace_start"() <{level = 10 : i32, message = "hdk,hqk->hdq"}> : () -> ()
    %cst_13 = arith.constant dense<0.000000e+00> : vector<4x8x16xf32>
    %38 = tpu.matmul %22, %37, %cst_13 {dimension_numbers = #tpu.dot_dimension_numbers<[2], [2], [1], [1], [0, 0, 0, 1, 1, 1], [0], [0]>} : vector<4x8x16xf32>, vector<4x16x16xf32>, vector<4x8x16xf32> -> vector<4x8x16xf32>
    "tpu.trace_stop"() : () -> ()
    %39 = vector.shape_cast %38 : vector<4x8x16xf32> to vector<32x16xf32>
    %40 = tpu.transpose %39, [1, 0] : vector<32x16xf32> -> vector<16x32xf32>
    %c0_14 = arith.constant 0 : index
    %c0_15 = arith.constant 0 : index
    %41 = vector.load %arg3[%c0_14, %c0_15] : memref<32x32xf32, #tpu.memory_space<vmem>>, vector<32x32xf32>
    %cst_16 = arith.constant dense<0.000000e+00> : vector<16x32xf32>
    %42 = tpu.matmul %40, %41, %cst_16 {dimension_numbers = #tpu.dot_dimension_numbers<[1], [0], [0], [1], [0, 0, 1, 1], [], []>} : vector<16x32xf32>, vector<32x32xf32>, vector<16x32xf32> -> vector<16x32xf32>
    %43 = arith.addf %0, %42 : vector<16x32xf32>
    %c0_17 = arith.constant 0 : index
    %c0_18 = arith.constant 0 : index
    %44 = vector.load %arg4[%c0_17, %c0_18] : memref<1x32xf32, #tpu.memory_space<vmem>>, vector<1x32xf32>
    %45 = arith.mulf %43, %43 : vector<16x32xf32>
    %cst_19 = arith.constant dense<0.000000e+00> : vector<16xf32>
    %46 = vector.multi_reduction <add>, %45, %cst_19 [1] : vector<16x32xf32> to vector<16xf32>
    %47 = vector.shape_cast %46 : vector<16xf32> to vector<16x1xf32>
    %cst_20 = arith.constant 3.200000e+01 : f32
    %48 = vector.broadcast %cst_20 : f32 to vector<16x1xf32>
    %49 = arith.divf %47, %48 : vector<16x1xf32>
    %cst_21 = arith.constant 9.99999997E-7 : f32
    %50 = vector.broadcast %cst_21 : f32 to vector<16x1xf32>
    %51 = arith.addf %49, %50 : vector<16x1xf32>
    %52 = math.rsqrt %51 : vector<16x1xf32>
    %53 = vector.broadcast %52 : vector<16x1xf32> to vector<16x32xf32>
    %54 = arith.mulf %43, %53 : vector<16x32xf32>
    %55 = vector.broadcast %44 : vector<1x32xf32> to vector<16x32xf32>
    %56 = arith.mulf %54, %55 : vector<16x32xf32>
    %c0_22 = arith.constant 0 : index
    %c0_23 = arith.constant 0 : index
    %57 = vector.load %arg5[%c0_22, %c0_23] : memref<32x64xf32, #tpu.memory_space<vmem>>, vector<32x64xf32>
    %cst_24 = arith.constant dense<0.000000e+00> : vector<16x64xf32>
    %58 = tpu.matmul %56, %57, %cst_24 {dimension_numbers = #tpu.dot_dimension_numbers<[1], [0], [0], [1], [0, 0, 1, 1], [], []>} : vector<16x32xf32>, vector<32x64xf32>, vector<16x64xf32> -> vector<16x64xf32>
    %cst_25 = arith.constant 0.000000e+00 : f32
    %59 = vector.broadcast %cst_25 : f32 to vector<16x64xf32>
    %60 = arith.maximumf %58, %59 : vector<16x64xf32>
    %c0_26 = arith.constant 0 : index
    %c0_27 = arith.constant 0 : index
    %61 = vector.load %arg6[%c0_26, %c0_27] : memref<64x32xf32, #tpu.memory_space<vmem>>, vector<64x32xf32>
    %cst_28 = arith.constant dense<0.000000e+00> : vector<16x32xf32>
    %62 = tpu.matmul %60, %61, %cst_28 {dimension_numbers = #tpu.dot_dimension_numbers<[1], [0], [0], [1], [0, 0, 1, 1], [], []>} : vector<16x64xf32>, vector<64x32xf32>, vector<16x32xf32> -> vector<16x32xf32>
    %63 = arith.addf %43, %62 : vector<16x32xf32>
    %c0_29 = arith.constant 0 : index
    %c0_30 = arith.constant 0 : index
    %64 = vector.load %arg8[%c0_29, %c0_30] : memref<16x32xf32, #tpu.memory_space<vmem>>, vector<16x32xf32>
    tpu.vector_store %arg8[%c0_29, %c0_30], %63 {strides = array<i32>} : memref<16x32xf32, #tpu.memory_space<vmem>>, vector<16x32xf32>,
    return
  }
}

</mosaic_0001>

<bundles_post_ra>
// kernel: eq.8
= control target key start
LH: loop header
LB: loop body
LE: loop exit
PB: predicated region body
PF: predicated region fallthrough
CT: control target
= control target key end

     0   :  { %vm7_vm0 = vcmask 64512   ;;  %vm13_vm1 = vcmask 130112   ;;  %s39_s0 = inlined_call_operand.vmem [shape: s32[2,8], index: 0, kind: input, shape index: {}]   ;;  %s40_s1 = inlined_call_operand.vmem [shape: s32[16], index: 1, kind: output, shape index: {}]  }
   0x1   :  { %v4_v0 = vld [vmem:[%s39_s0] sm:$0x3]  ;;  %s22_s0 = smov 8  }
   0x2   :  { %5 = vst [vmem:[#allocation1] sm:$0x3] %v4_v0 }
   0x9   :  { %v10_v1 = vld [vmem:[#allocation1 + $0x1] sm:$0x1]   ;;  %v6_v2 = vld [vmem:[#allocation1] sm:$0x1]  }
   0xa   :  { %11 = vrot.lane.b32.xlu0 %v10_v1, %s22_s0  ;;  %8 = vst.msk [vmem:[#allocation0] sm:$0x1] %vm7_vm0, %v6_v2  }
  0x7c   :  { %v12_v3 = vpop.permute.xlu0 %11  }
  0x7d   :  { %14 = vst.msk [vmem:[#allocation0] sm:$0x1] %vm13_vm1, %v12_v3  }
  0x84   :  { %v17_v4 = vld [vmem:[#allocation0] sm:$0x1] }
  0x85   :  { %20 = vst [vmem:[%s40_s1] sm:$0x1] %v17_v4 }

// kernel: mta_block_forward.1
= control target key start
LH: loop header
LB: loop body
LE: loop exit
PB: predicated region body
PF: predicated region fallthrough
CT: control target
= control target key end

     0   :  { %vm35_vm0 = vcmask 261120   ;;  %s1368_s0 = inlined_call_operand.vmem [shape: f32[16,32], index: 0, kind: input, shape index: {}]   ;;  %s1369_s1 = inlined_call_operand.vmem [shape: f32[1,32], index: 1, kind: input, shape index: {}]   ;;  %s1370_s2 = inlined_call_operand.vmem [shape: f32[96,32], index: 2, kind: input, shape index: {}]   ;;  %s1371_s3 = inlined_call_operand.vmem [shape: f32[32,32], index: 3, kind: input, shape index: {}]   ;;  %s1372_s4 = inlined_call_operand.vmem [shape: f32[1,32], index: 4, kind: input, shape index: {}]   ;;  %s1373_s5 = inlined_call_operand.vmem [shape: f32[32,64], index: 5, kind: input, shape index: {}]   ;;  %s1374_s6 = inlined_call_operand.vmem [shape: f32[64,32], index: 6, kind: input, shape index: {}]   ;;  %s1375_s7 = inlined_call_operand.vmem [shape: f32[16,16], index: 7, kind: input, shape index: {}]   ;;  %s1376_s8 = inlined_call_operand.hbm [shape: f32[16,32], index: 8, kind: output, shape index: {}]  }
   0x1   :  { %v1116_v0 = vld [vmem:[%s1368_s0 + $0x8] sm:$0xff] }
   0x2   :  { %v34_v1 = vmul.f32 %v1116_v0, %v1116_v0 }
   0x3   :  { %13 = vsyncpa [#allocation3], 0  ;;  %v1123_v2 = vld [vmem:[%s1368_s0] sm:$0xff]  ;;  %v1064_v6 = vmov 32.0   ;;  %v81_v39 = vld [vmem:[%s1370_s2 + $0x8] sm:$0xff]  ;;  %vm317_vm8 = vcmask 64512  }
   0x4   :  { %v39_v3 = vsel %vm35_vm0, %v34_v1, 0.0  ;;  %v33_v4 = vmul.f32 %v1123_v2, %v1123_v2  ;;  %996 = vrcp.f32 %v1064_v6  ;;  %v994_v27 = vld [vmem:[%s1369_s1] ss:$0 sm:$0xff]  ;;  %v82_v40 = vld [vmem:[%s1370_s2 + $0x10] sm:$0xff]  ;;  %v83_v41 = vld [vmem:[%s1370_s2 + $0x18] sm:$0xff]  ;;  %vm434_vm9 = vcmask 130048  }
   0x5   :  { %40 = vadd.xlane.f32.xlu0 %v39_v3  ;;  %v80_v38 = vld [vmem:[%s1370_s2] sm:$0xff]  ;;  %v85_v43 = vld [vmem:[%s1370_s2 + $0x28] sm:$0xff]  ;;  %v86_v45 = vld [vmem:[%s1370_s2 + $0x30] sm:$0xff]  ;;  %s1065_s16 = smov [#allocation2]   ;;  %s933_s19 = sshll.u32 %s1376_s8, 4  ;;  %s934_s19 = int_to_ptr.hbm [resolvable:$true] %s933_s19 }
   0x6   :  { %v36_v5 = vsel %vm35_vm0, %v33_v4, 0.0  ;;  %v84_v42 = vld [vmem:[%s1370_s2 + $0x20] sm:$0xff]  ;;  %v87_v47 = vld [vmem:[%s1370_s2 + $0x38] sm:$0xff]  ;;  %v89_v51 = vld [vmem:[%s1370_s2 + $0x48] sm:$0xff]  ;;  %s931_s17 = sshll.u32 %s1065_s16, 4  ;;  %s1067_s20 = smov 8   ;;  %s932_s17 = int_to_ptr.vmem [resolvable:$true] %s931_s17 }
   0x7   :  { %v88_v46 = vld [vmem:[%s1370_s2 + $0x40] sm:$0xff]  ;;  %v90_v54 = vld [vmem:[%s1370_s2 + $0x50] sm:$0xff]  ;;  %v91_v55 = vld [vmem:[%s1370_s2 + $0x58] sm:$0xff] }
   0x8   :  { %v315_v6 = vld [vmem:[%s1375_s7] sm:$0xff] }
   0xa   :  { %v997_v7 = vpop.eup %996 }
   0xb   :  { %v43_v8 = vmul.f32 32.0, %v997_v7  ;;  %vm47_vm1 = vweird.f32 %v997_v7 }
   0xd   :  { %37 = vadd.xlane.f32.xlu0 %v36_v5  ;;  %v44_v9 = vsub.f32 1.0, %v43_v8 }
   0xf   :  { %v45_v10 = vmul.f32 %v997_v7, %v44_v9 }
  0x11   :  { %v46_v11 = vadd.f32 %v997_v7, %v45_v10 }
  0x13   :  { %v1129_v12 = vsel %vm47_vm1, %v997_v7, %v46_v11  ;;  %v316_v11 = vld [vmem:[%s1375_s7 + $0x8] sm:$0xff] }
  0x78   :  { %v41_v13 = vpop.xlane.xlu0 %40 }
  0x79   :  { %v50_v14 = vmul.f32 %v1129_v12, %v41_v13 }
  0x7b   :  { %v52_v15 = vadd.f32 1e-06, %v50_v14 }
  0x7d   :  { %998 = vrsqrt.f32 %v52_v15  ;;  %vm69_vm3 = vweird.f32 %v52_v15 }
  0x80   :  { %v38_v16 = vpop.xlane.xlu0 %37 }
  0x81   :  { %v49_v17 = vmul.f32 %v1129_v12, %v38_v16 }
  0x83   :  { %v999_v18 = vpop.eup %998  ;;  %v51_v19 = vadd.f32 1e-06, %v49_v17 }
  0x84   :  { %v64_v20 = vmul.f32 %v999_v18, %v52_v15  ;;  %vm70_vm2 = vweird.f32 %v999_v18 }
  0x85   :  { %1000 = vrsqrt.f32 %v51_v19  ;;  %vm71_vm4 = vmor %vm69_vm3, %vm70_vm2  ;;  %vm59_vm6 = vweird.f32 %v51_v19 }
  0x86   :  { %v65_v21 = vmul.f32 %v999_v18, %v64_v20 }
  0x88   :  { %v66_v22 = vmul.f32 0.5, %v65_v21 }
  0x8a   :  { %v67_v23 = vsub.f32 1.5, %v66_v22 }
  0x8b   :  { %v1001_v24 = vpop.eup %1000 }
  0x8c   :  { %v68_v25 = vmul.f32 %v999_v18, %v67_v23  ;;  %v54_v26 = vmul.f32 %v1001_v24, %v51_v19  ;;  %vm60_vm5 = vweird.f32 %v1001_v24 }
  0x8d   :  { %vm61_vm7 = vmor %vm59_vm6, %vm60_vm5 }
  0x8e   :  { %v55_v28 = vmul.f32 %v1001_v24, %v54_v26  ;;  %v72_v29 = vsel %vm71_vm4, %v999_v18, %v68_v25 }
  0x8f   :  { %v74_v30 = vmul.f32 %v72_v29, %v1116_v0 }
  0x90   :  { %v56_v31 = vmul.f32 0.5, %v55_v28 }
  0x91   :  { %v79_v32 = vmul.f32 %v994_v27, %v74_v30 }
  0x92   :  { %v57_v33 = vsub.f32 1.5, %v56_v31 }
  0x93   :  { %945 = vmatpush.xpose.msk.msra.mxu0 %vm35_vm0, %v79_v32  ;;  %985 = vmatpush.xpose.msk.msra.mxu1 %vm35_vm0, %v79_v32 }
  0x94   :  { %v58_v34 = vmul.f32 %v1001_v24, %v57_v33  ;;  %986 = vmatpush.xpose.msk.msra.mxu2 %vm35_vm0, %v79_v32 }
  0x96   :  { %v62_v35 = vsel %vm61_vm7, %v1001_v24, %v58_v34 }
  0x97   :  { %v73_v36 = vmul.f32 %v62_v35, %v1123_v2 }
  0x99   :  { %v78_v37 = vmul.f32 %v994_v27, %v73_v36 }
  0x9b   :  { %946 = vmatpush.xpose.msk.msra.mxu0 %vm35_vm0, %v78_v37  ;;  %987 = vmatpush.xpose.msk.msra.mxu1 %vm35_vm0, %v78_v37 }
  0x9c   :  { %988 = vmatpush.xpose.msk.msra.mxu2 %vm35_vm0, %v78_v37 }
  0x9e   :  { %947 = vmatmul.msk.f32.vlgmr.msra.gmra.mxu0 %vm35_vm0, %v80_v38  ;;  %955 = vmatmul.msk.f32.vlgmr.msra.gmra.mxu1 %vm35_vm0, %v88_v46 }
  0x9f   :  { %957 = vmatmul.msk.f32.vlgmr.msra.gmra.mxu2 %vm35_vm0, %v90_v54 }
  0xa6   :  { %948 = vmatmul.msk.f32.gmra.mxu0 %vm35_vm0, %v81_v39  ;;  %956 = vmatmul.msk.f32.gmra.mxu1 %vm35_vm0, %v89_v51 }
  0xa7   :  { %958 = vmatmul.msk.f32.gmra.mxu2 %vm35_vm0, %v91_v55 }
  0xae   :  { %949 = vmatmul.msk.f32.gmra.mxu0 %vm35_vm0, %v82_v40 }
  0xb6   :  { %950 = vmatmul.msk.f32.gmra.mxu0 %vm35_vm0, %v83_v41 }
  0xbe   :  { %951 = vmatmul.msk.f32.gmra.mxu0 %vm35_vm0, %v84_v42 }
  0xc6   :  { %952 = vmatmul.msk.f32.gmra.mxu0 %vm35_vm0, %v85_v43 }
  0xce   :  { %953 = vmatmul.msk.f32.gmra.mxu0 %vm35_vm0, %v86_v45 }
  0xd6   :  { %954 = vmatmul.msk.f32.gmra.mxu0 %vm35_vm0, %v87_v47 }
 0x11b   :  { %v151_v44 = vpop.f32.mrf.mxu0  ;;  %v1200_v4 = vpop.f32.mrf.mxu1 }
 0x11c   :  { %187 = vxpose.xlu1.b32.start.end [1/1] (short) (narrow) %v151_v44, 16 }
 0x122   :  { %v1207_v9 = vpop.f32.mrf.mxu2 }
 0x123   :  { %v154_v48 = vpop.f32.mrf.mxu0  ;;  %v1202_v5 = vpop.f32.mrf.mxu1 }
 0x12a   :  { %v1214_v16 = vpop.f32.mrf.mxu2 }
 0x12b   :  { %v157_v49 = vpop.f32.mrf.mxu0 }
 0x12c   :  { %219 = vxpose.xlu1.b32.start.end [1/1] (short) (narrow) %v154_v48, 16  ;;  %251 = vxpose.xlu2.b32.start.end [1/1] (short) (narrow) %v157_v49, 16 }
 0x133   :  { %v160_v50 = vpop.f32.mrf.mxu0 }
 0x13b   :  { %v163_v52 = vpop.f32.mrf.mxu0 }
 0x13c   :  { %283 = vxpose.xlu2.b32.start.end [1/1] (short) (narrow) %v160_v50, 16  ;;  %339 = vmatpush.msrb.mxu1 %v163_v52 }
 0x143   :  { %v166_v53 = vpop.f32.mrf.mxu0 }
 0x144   :  { %368 = vmatpush.msrb.mxu2 %v166_v53 }
 0x14b   :  { %v169_v56 = vpop.f32.mrf.mxu0 }
 0x14c   :  { %397 = vmatpush.msra.mxu3 %v169_v56 }
 0x153   :  { %v172_v57 = vpop.f32.mrf.mxu0 }
 0x154   :  { %426 = vmatpush.msra.mxu1 %v172_v57 }
 0x1c0   :  { %v203_v58 = vpop.trf.xlu1 }
 0x1c1   :  { %959 = vmatmul.msk.f32.vlgmr.msrb.gmra.mxu1 %vm317_vm8, %v203_v58 }
 0x1c5   :  { %v267_v59 = vpop.trf.xlu2 }
 0x1c6   :  { %963 = vmatmul.msk.f32.vlgmr.msra.gmra.mxu3 %vm317_vm8, %v267_v59 }
 0x1c8   :  { %v204_v60 = vpop.trf.xlu1 }
 0x1c9   :  { %960 = vmatmul.msk.f32.gmra.mxu1 %vm317_vm8, %v204_v60 }
 0x1cd   :  { %v268_v61 = vpop.trf.xlu2 }
 0x1ce   :  { %964 = vmatmul.msk.f32.gmra.mxu3 %vm317_vm8, %v268_v61 }
 0x1d0   :  { %v235_v62 = vpop.trf.xlu1 }
 0x1d1   :  { %961 = vmatmul.msk.f32.vlgmr.msrb.gmra.mxu2 %vm317_vm8, %v235_v62 }
 0x1d5   :  { %v299_v63 = vpop.trf.xlu2 }
 0x1d6   :  { %965 = vmatmul.msk.f32.vlgmr.msra.gmra.mxu1 %vm317_vm8, %v299_v63 }
 0x1d8   :  { %v236_v1 = vpop.trf.xlu1 }
 0x1d9   :  { %962 = vmatmul.msk.f32.gmra.mxu2 %vm317_vm8, %v236_v1 }
 0x1dd   :  { %v300_v3 = vpop.trf.xlu2 }
 0x1de   :  { %966 = vmatmul.msk.f32.gmra.mxu1 %vm317_vm8, %v300_v3 }
 0x23e   :  { %v341_v7 = vpop.f32.mrf.mxu1 }
 0x23f   :  { %v342_v8 = vadd.f32 %v341_v7, %v315_v6 }
 0x241   :  { %v435_v10 = vsel %vm434_vm9, %v342_v8, -inf }
 0x242   :  { %436 = vmax.xlane.f32.xlu1 %v435_v10 }
 0x246   :  { %v344_v13 = vpop.f32.mrf.mxu1 }
 0x247   :  { %v345_v14 = vadd.f32 %v344_v13, %v316_v11 }
 0x249   :  { %v438_v15 = vsel %vm434_vm9, %v345_v14, -inf  ;;  %v399_v23 = vpop.f32.mrf.mxu3 }
 0x24a   :  { %439 = vmax.xlane.f32.xlu0 %v438_v15  ;;  %v400_v24 = vadd.f32 %v399_v23, %v315_v6 }
 0x24c   :  { %v447_v26 = vsel %vm434_vm9, %v400_v24, -inf }
 0x251   :  { %v402_v29 = vpop.f32.mrf.mxu3 }
 0x252   :  { %v403_v30 = vadd.f32 %v402_v29, %v316_v11 }
 0x253   :  { %v428_v25 = vpop.f32.mrf.mxu1 }
 0x254   :  { %v370_v17 = vpop.f32.mrf.mxu2  ;;  %v429_v27 = vadd.f32 %v428_v25, %v315_v6  ;;  %v450_v32 = vsel %vm434_vm9, %v403_v30, -inf }
 0x255   :  { %v371_v18 = vadd.f32 %v370_v17, %v315_v6 }
 0x256   :  { %v453_v28 = vsel %vm434_vm9, %v429_v27, -inf }
 0x257   :  { %v441_v19 = vsel %vm434_vm9, %v371_v18, -inf }
 0x258   :  { %442 = vmax.xlane.f32.xlu2 %v441_v19 }
 0x25b   :  { %v431_v31 = vpop.f32.mrf.mxu1 }
 0x25c   :  { %v373_v20 = vpop.f32.mrf.mxu2  ;;  %v432_v33 = vadd.f32 %v431_v31, %v316_v11 }
 0x25d   :  { %v374_v21 = vadd.f32 %v373_v20, %v316_v11 }
 0x25e   :  { %v456_v34 = vsel %vm434_vm9, %v432_v33, -inf }
 0x25f   :  { %v444_v22 = vsel %vm434_vm9, %v374_v21, -inf }
 0x260   :  { %445 = vmax.xlane.f32.xlu0 %v444_v22 }
 0x268   :  { %448 = vmax.xlane.f32.xlu0 %v447_v26 }
 0x270   :  { %454 = vmax.xlane.f32.xlu0 %v453_v28 }
 0x278   :  { %451 = vmax.xlane.f32.xlu0 %v450_v32 }
 0x280   :  { %457 = vmax.xlane.f32.xlu0 %v456_v34 }
 0x2b5   :  { %v437_v35 = vpop.xlane.xlu1 %436 }
 0x2b6   :  { %v459_v36 = vsub.f32 %v342_v8, %v437_v35 }
 0x2b8   :  { %v467_v37 = vmul.f32 1.442695, %v459_v36 }
 0x2ba   :  { %1002 = vpow2.f32 %v467_v37 }
 0x2bd   :  { %v440_v38 = vpop.xlane.xlu0 %439 }
 0x2be   :  { %v460_v39 = vsub.f32 %v345_v14, %v440_v38 }
 0x2c0   :  { %v1222_v40 = vpop.eup %1002  ;;  %v469_v41 = vmul.f32 1.442695, %v460_v39 }
 0x2c1   :  { %v483_v42 = vsel %vm434_vm9, %v1222_v40, 0.0 }
 0x2c2   :  { %1004 = vpow2.f32 %v469_v41  ;;  %484 = vadd.xlane.f32.xlu0 %v483_v42 }
 0x2c8   :  { %v1226_v43 = vpop.eup %1004 }
 0x2c9   :  { %v486_v44 = vsel %vm434_vm9, %v1226_v43, 0.0 }
 0x2ca   :  { %487 = vadd.xlane.f32.xlu0 %v486_v44 }
 0x2cb   :  { %v443_v45 = vpop.xlane.xlu2 %442 }
 0x2cc   :  { %v461_v46 = vsub.f32 %v371_v18, %v443_v45 }
 0x2ce   :  { %v471_v47 = vmul.f32 1.442695, %v461_v46 }
 0x2d0   :  { %1006 = vpow2.f32 %v471_v47 }
 0x2d3   :  { %v446_v48 = vpop.xlane.xlu0 %445 }
 0x2d4   :  { %v462_v49 = vsub.f32 %v374_v21, %v446_v48 }
 0x2d6   :  { %v1230_v50 = vpop.eup %1006  ;;  %v473_v51 = vmul.f32 1.442695, %v462_v49 }
 0x2d7   :  { %v489_v52 = vsel %vm434_vm9, %v1230_v50, 0.0 }
 0x2d8   :  { %1008 = vpow2.f32 %v473_v51  ;;  %490 = vadd.xlane.f32.xlu0 %v489_v52 }
 0x2db   :  { %v449_v53 = vpop.xlane.xlu0 %448 }
 0x2dc   :  { %v463_v54 = vsub.f32 %v400_v24, %v449_v53 }
 0x2de   :  { %v1234_v55 = vpop.eup %1008  ;;  %v475_v56 = vmul.f32 1.442695, %v463_v54 }
 0x2df   :  { %v492_v57 = vsel %vm434_vm9, %v1234_v55, 0.0 }
 0x2e0   :  { %1010 = vpow2.f32 %v475_v56  ;;  %493 = vadd.xlane.f32.xlu0 %v492_v57 }
 0x2e3   :  { %v455_v58 = vpop.xlane.xlu0 %454 }
 0x2e4   :  { %v465_v7 = vsub.f32 %v429_v27, %v455_v58 }
 0x2e6   :  { %v1238_v59 = vpop.eup %1010  ;;  %v479_v11 = vmul.f32 1.442695, %v465_v7 }
 0x2e7   :  { %v495_v60 = vsel %vm434_vm9, %v1238_v59, 0.0 }
 0x2e8   :  { %496 = vadd.xlane.f32.xlu0 %v495_v60 }
 0x2eb   :  { %v452_v61 = vpop.xlane.xlu0 %451 }
 0x2ec   :  { %v464_v62 = vsub.f32 %v403_v30, %v452_v61 }
 0x2ee   :  { %v477_v63 = vmul.f32 1.442695, %v464_v62 }
 0x2f0   :  { %1012 = vpow2.f32 %v477_v63 }
 0x2f3   :  { %v458_v1 = vpop.xlane.xlu0 %457 }
 0x2f4   :  { %v466_v3 = vsub.f32 %v432_v33, %v458_v1 }
 0x2f6   :  { %v1242_v6 = vpop.eup %1012  ;;  %v481_v8 = vmul.f32 1.442695, %v466_v3 }
 0x2f7   :  { %v498_v10 = vsel %vm434_vm9, %v1242_v6, 0.0 }
 0x2f8   :  { %1014 = vpow2.f32 %v481_v8  ;;  %499 = vadd.xlane.f32.xlu0 %v498_v10 }
 0x2f9   :  { %1016 = vpow2.f32 %v479_v11 }
 0x2fe   :  { %v1246_v13 = vpop.eup %1014 }
 0x2ff   :  { %v504_v14 = vsel %vm434_vm9, %v1246_v13, 0.0  ;;  %v1250_v15 = vpop.eup %1016 }
 0x300   :  { %505 = vadd.xlane.f32.xlu0 %v504_v14  ;;  %v501_v17 = vsel %vm434_vm9, %v1250_v15, 0.0 }
 0x308   :  { %502 = vadd.xlane.f32.xlu0 %v501_v17 }
 0x335   :  { %v485_v18 = vpop.xlane.xlu0 %484 }
 0x336   :  { %1018 = vrcp.f32 %v485_v18  ;;  %vm512_vm12 = vweird.f32 %v485_v18  ;;  %v518_v31 = vand.u32 2147483648, %v485_v18  ;;  %v516_v33 = vand.u32 2147483647, %v485_v18 }
 0x338   :  { %v519_v39 = vor.u32 1.1754944e-38, %v518_v31  ;;  %vm517_vm2 = vcmp.eq.f32.partialorder %v516_v33, 8.507059e+37 }
 0x33c   :  { %v1019_v19 = vpop.eup %1018 }
 0x33d   :  { %v508_v20 = vmul.f32 %v1019_v19, %v485_v18  ;;  %v488_v21 = vpop.xlane.xlu0 %487  ;;  %vm513_vm10 = vweird.f32 %v1019_v19 }
 0x33e   :  { %1020 = vrcp.f32 %v488_v21  ;;  %v533_v27 = vand.u32 2147483648, %v488_v21  ;;  %v531_v30 = vand.u32 2147483647, %v488_v21  ;;  %vm1254_vm13 = vmor %vm512_vm12, %vm513_vm10  ;;  %vm527_vm14 = vweird.f32 %v488_v21 }
 0x33f   :  { %v509_v22 = vsub.f32 1.0, %v508_v20 }
 0x340   :  { %v534_v36 = vor.u32 1.1754944e-38, %v533_v27  ;;  %vm532_vm1 = vcmp.eq.f32.partialorder %v531_v30, 8.507059e+37 }
 0x341   :  { %v510_v24 = vmul.f32 %v1019_v19, %v509_v22 }
 0x343   :  { %v511_v28 = vadd.f32 %v1019_v19, %v510_v24 }
 0x344   :  { %v1021_v23 = vpop.eup %1020 }
 0x345   :  { %v523_v25 = vmul.f32 %v1021_v23, %v488_v21  ;;  %vm528_vm11 = vweird.f32 %v1021_v23  ;;  %v515_v38 = vsel %vm1254_vm13, %v1019_v19, %v511_v28 }
 0x346   :  { %vm529_vm15 = vmor %vm527_vm14, %vm528_vm11  ;;  %v520_v44 = vsel %vm517_vm2, %v519_v39, %v515_v38 }
 0x347   :  { %v524_v26 = vsub.f32 1.0, %v523_v25  ;;  %v521_v48 = vmul.f32 %v1222_v40, %v520_v44 }
 0x349   :  { %v525_v29 = vmul.f32 %v1021_v23, %v524_v26 }
 0x34b   :  { %v526_v34 = vadd.f32 %v1021_v23, %v525_v29  ;;  %v491_v35 = vpop.xlane.xlu0 %490 }
 0x34c   :  { %1022 = vrcp.f32 %v491_v35  ;;  %vm542_vm5 = vweird.f32 %v491_v35  ;;  %v548_v40 = vand.u32 2147483648, %v491_v35  ;;  %v546_v62 = vand.u32 2147483647, %v491_v35 }
 0x34d   :  { %v530_v37 = vsel %vm529_vm15, %v1021_v23, %v526_v34 }
 0x34e   :  { %v535_v41 = vsel %vm532_vm1, %v534_v36, %v530_v37  ;;  %v549_v3 = vor.u32 1.1754944e-38, %v548_v40  ;;  %vm547_vm11 = vcmp.eq.f32.partialorder %v546_v62, 8.507059e+37  ;;  %v778_v62 = vld [vmem:[%s1371_s3 + $0x18] sm:$0xff] }
 0x34f   :  { %v536_v42 = vmul.f32 %v1226_v43, %v535_v41  ;;  %797 = vmatpush.msrb.mxu1 %v778_v62 }
 0x351   :  { %967 = vmatpush.xpose.msk.msra.mxu2 %vm434_vm9, %v536_v42 }
 0x352   :  { %v1023_v45 = vpop.eup %1022 }
 0x353   :  { %v538_v46 = vmul.f32 %v1023_v45, %v491_v35  ;;  %v494_v47 = vpop.xlane.xlu0 %493  ;;  %vm543_vm3 = vweird.f32 %v1023_v45 }
 0x354   :  { %1024 = vrcp.f32 %v494_v47  ;;  %v563_v43 = vand.u32 2147483648, %v494_v47  ;;  %v561_v58 = vand.u32 2147483647, %v494_v47  ;;  %vm557_vm6 = vweird.f32 %v494_v47  ;;  %vm544_vm7 = vmor %vm542_vm5, %vm543_vm3 }
 0x355   :  { %968 = vmatpush.xpose.msk.msra.mxu2 %vm434_vm9, %v521_v48  ;;  %v539_v49 = vsub.f32 1.0, %v538_v46 }
 0x356   :  { %v564_v63 = vor.u32 1.1754944e-38, %v563_v43  ;;  %vm562_vm10 = vcmp.eq.f32.partialorder %v561_v58, 8.507059e+37 }
 0x357   :  { %v540_v52 = vmul.f32 %v1023_v45, %v539_v49 }
 0x358   :  { %969 = vmatmul.msk.f32.vlgmr.msra.gmra.mxu2 %vm434_vm9, %v1200_v4 }
 0x359   :  { %v541_v60 = vadd.f32 %v1023_v45, %v540_v52 }
 0x35a   :  { %v1025_v51 = vpop.eup %1024 }
 0x35b   :  { %v553_v53 = vmul.f32 %v1025_v51, %v494_v47  ;;  %v497_v57 = vpop.xlane.xlu0 %496  ;;  %vm558_vm4 = vweird.f32 %v1025_v51  ;;  %v545_v1 = vsel %vm544_vm7, %v1023_v45, %v541_v60 }
 0x35c   :  { %1026 = vrcp.f32 %v497_v57  ;;  %vm559_vm8 = vmor %vm557_vm6, %vm558_vm4  ;;  %v550_v10 = vsel %vm547_vm11, %v549_v3, %v545_v1  ;;  %vm572_vm14 = vweird.f32 %v497_v57  ;;  %v578_v27 = vand.u32 2147483648, %v497_v57 }
 0x35d   :  { %v554_v54 = vsub.f32 1.0, %v553_v53  ;;  %v551_v14 = vmul.f32 %v1230_v50, %v550_v10 }
 0x35e   :  { %v579_v36 = vor.u32 1.1754944e-38, %v578_v27  ;;  %v889_v27 = vld [vmem:[%s1374_s6 + $0x20] sm:$0xff] }
 0x35f   :  { %v555_v56 = vmul.f32 %v1025_v51, %v554_v54 }
 0x361   :  { %v556_v61 = vadd.f32 %v1025_v51, %v555_v56 }
 0x362   :  { %v1027_v11 = vpop.eup %1026 }
 0x363   :  { %v560_v4 = vsel %vm559_vm8, %v1025_v51, %v556_v61  ;;  %v568_v17 = vmul.f32 %v1027_v11, %v497_v57  ;;  %vm573_vm12 = vweird.f32 %v1027_v11 }
 0x364   :  { %v565_v7 = vsel %vm562_vm10, %v564_v63, %v560_v4  ;;  %vm1272_vm15 = vmor %vm572_vm14, %vm573_vm12  ;;  %v777_v63 = vld [vmem:[%s1371_s3 + $0x10] sm:$0xff] }
 0x365   :  { %v566_v8 = vmul.f32 %v1234_v55, %v565_v7  ;;  %v569_v19 = vsub.f32 1.0, %v568_v17  ;;  %798 = vmatpush.msrb.mxu1 %v777_v63 }
 0x367   :  { %970 = vmatpush.xpose.msk.msrb.mxu3 %vm434_vm9, %v566_v8  ;;  %v570_v21 = vmul.f32 %v1027_v11, %v569_v19 }
 0x369   :  { %v571_v25 = vadd.f32 %v1027_v11, %v570_v21  ;;  %v852_v21 = vld [vmem:[%s1373_s5 + $0x10] sm:$0xff] }
 0x36b   :  { %971 = vmatpush.xpose.msk.msrb.mxu3 %vm434_vm9, %v551_v14  ;;  %v500_v18 = vpop.xlane.xlu0 %499  ;;  %v575_v35 = vsel %vm1272_vm15, %v1027_v11, %v571_v25  ;;  %v892_v25 = vld [vmem:[%s1374_s6 + $0x38] sm:$0xff] }
 0x36c   :  { %1028 = vrcp.f32 %v500_v18  ;;  %v593_v24 = vand.u32 2147483648, %v500_v18  ;;  %v591_v50 = vand.u32 2147483647, %v500_v18  ;;  %vm587_vm1 = vweird.f32 %v500_v18 }
 0x36e   :  { %972 = vmatmul.msk.f32.vlgmr.msrb.gmra.mxu3 %vm434_vm9, %v1202_v5  ;;  %v576_v5 = vand.u32 2147483647, %v497_v57  ;;  %v594_v31 = vor.u32 1.1754944e-38, %v593_v24  ;;  %vm592_vm3 = vcmp.eq.f32.partialorder %v591_v50, 8.507059e+37  ;;  %v890_v50 = vld [vmem:[%s1374_s6 + $0x28] sm:$0xff] }
 0x370   :  { %vm577_vm4 = vcmp.eq.f32.partialorder %v576_v5, 8.507059e+37 }
 0x371   :  { %v580_v42 = vsel %vm577_vm4, %v579_v36, %v575_v35  ;;  %vm893_vm4 = vcmask 523264  }
 0x372   :  { %v1029_v20 = vpop.eup %1028  ;;  %v581_v47 = vmul.f32 %v1238_v59, %v580_v42 }
 0x373   :  { %v583_v22 = vmul.f32 %v1029_v20, %v500_v18  ;;  %v506_v55 = vpop.xlane.xlu0 %505  ;;  %vm588_vm13 = vweird.f32 %v1029_v20 }
 0x374   :  { %1030 = vrcp.f32 %v506_v55  ;;  %vm589_vm2 = vmor %vm587_vm1, %vm588_vm13  ;;  %v623_v41 = vand.u32 2147483648, %v506_v55  ;;  %v621_v45 = vand.u32 2147483647, %v506_v55  ;;  %vm617_vm6 = vweird.f32 %v506_v55 }
 0x375   :  { %v584_v23 = vsub.f32 1.0, %v583_v22  ;;  %v850_v22 = vld [vmem:[%s1373_s5] sm:$0xff] }
 0x376   :  { %v624_v49 = vor.u32 1.1754944e-38, %v623_v41  ;;  %vm622_vm8 = vcmp.eq.f32.partialorder %v621_v45, 8.507059e+37 }
 0x377   :  { %v585_v26 = vmul.f32 %v1029_v20, %v584_v23 }
 0x379   :  { %v586_v29 = vadd.f32 %v1029_v20, %v585_v26  ;;  %v891_v26 = vld [vmem:[%s1374_s6 + $0x30] sm:$0xff] }
 0x37a   :  { %v1031_v30 = vpop.eup %1030 }
 0x37b   :  { %v590_v32 = vsel %vm589_vm2, %v1029_v20, %v586_v29  ;;  %v613_v33 = vmul.f32 %v1031_v30, %v506_v55  ;;  %v503_v34 = vpop.xlane.xlu0 %502  ;;  %vm618_vm5 = vweird.f32 %v1031_v30  ;;  %v888_v29 = vld [vmem:[%s1374_s6 + $0x18] sm:$0xff] }
 0x37c   :  { %v595_v37 = vsel %vm592_vm3, %v594_v31, %v590_v32  ;;  %1032 = vrcp.f32 %v503_v34  ;;  %vm619_vm7 = vmor %vm617_vm6, %vm618_vm5  ;;  %v608_v43 = vand.u32 2147483648, %v503_v34  ;;  %v606_v57 = vand.u32 2147483647, %v503_v34  ;;  %v887_v32 = vld [vmem:[%s1374_s6 + $0x10] sm:$0xff] }
 0x37d   :  { %v614_v38 = vsub.f32 1.0, %v613_v33  ;;  %v596_v39 = vmul.f32 %v1242_v6, %v595_v37  ;;  %vm602_vm11 = vweird.f32 %v503_v34 }
 0x37e   :  { %v609_v58 = vor.u32 1.1754944e-38, %v608_v43  ;;  %vm607_vm13 = vcmp.eq.f32.partialorder %v606_v57, 8.507059e+37 }
 0x37f   :  { %v615_v44 = vmul.f32 %v1031_v30, %v614_v38  ;;  %973 = vmatpush.xpose.msk.msrb.mxu2 %vm434_vm9, %v596_v39  ;;  %v995_v39 = vld [vmem:[%s1372_s4] ss:$0 sm:$0xff] }
 0x381   :  { %v616_v46 = vadd.f32 %v1031_v30, %v615_v44 }
 0x382   :  { %v1033_v48 = vpop.eup %1032 }
 0x383   :  { %v620_v51 = vsel %vm619_vm7, %v1031_v30, %v616_v46  ;;  %v598_v52 = vmul.f32 %v1033_v48, %v503_v34  ;;  %974 = vmatpush.xpose.msk.msrb.mxu2 %vm434_vm9, %v581_v47  ;;  %vm603_vm10 = vweird.f32 %v1033_v48 }
 0x384   :  { %v625_v6 = vsel %vm622_vm8, %v624_v49, %v620_v51  ;;  %vm604_vm12 = vmor %vm602_vm11, %vm603_vm10 }
 0x385   :  { %v599_v53 = vsub.f32 1.0, %v598_v52  ;;  %v626_v54 = vmul.f32 %v1246_v13, %v625_v6  ;;  %v886_v6 = vld [vmem:[%s1374_s6 + $0x8] sm:$0xff] }
 0x386   :  { %975 = vmatmul.msk.f32.vlgmr.msrb.gmra.mxu2 %vm434_vm9, %v1207_v9 }
 0x387   :  { %v600_v56 = vmul.f32 %v1033_v48, %v599_v53  ;;  %976 = vmatpush.xpose.msk.msra.mxu3 %vm434_vm9, %v626_v54  ;;  %v885_v53 = vld [vmem:[%s1374_s6] sm:$0xff]  ;;  %s1066_s6 = smov 128  }
 0x389   :  { %v601_v59 = vadd.f32 %v1033_v48, %v600_v56 }
 0x38b   :  { %v605_v60 = vsel %vm604_vm12, %v1033_v48, %v601_v59 }
 0x38c   :  { %v610_v40 = vsel %vm607_vm13, %v609_v58, %v605_v60 }
 0x38d   :  { %v611_v61 = vmul.f32 %v1250_v15, %v610_v40  ;;  %v776_v15 = vld [vmem:[%s1371_s3 + $0x8] sm:$0xff] }
 0x38e   :  { %799 = vmatpush.msrb.mxu1 %v776_v15 }
 0x38f   :  { %977 = vmatpush.xpose.msk.msra.mxu3 %vm434_vm9, %v611_v61 }
 0x392   :  { %978 = vmatmul.msk.f32.vlgmr.msra.gmra.mxu3 %vm434_vm9, %v1214_v16  ;;  %v775_v16 = vld [vmem:[%s1371_s3] sm:$0xff] }
 0x393   :  { %800 = vmatpush.msrb.mxu1 %v775_v16  ;;  %908 = vmatpush.msrb.mxu3 %v892_v25 }
 0x395   :  { %909 = vmatpush.msrb.mxu3 %v891_v26 }
 0x397   :  { %910 = vmatpush.msrb.mxu3 %v890_v50 }
 0x399   :  { %911 = vmatpush.msrb.mxu3 %v889_v27 }
 0x39b   :  { %912 = vmatpush.msrb.mxu3 %v888_v29 }
 0x39d   :  { %913 = vmatpush.msrb.mxu3 %v887_v32 }
 0x39f   :  { %914 = vmatpush.msrb.mxu3 %v886_v6 }
 0x3a1   :  { %915 = vmatpush.msrb.mxu3 %v885_v53 }
 0x3db   :  { %v653_v9 = vpop.f32.mrf.mxu2 }
 0x3dc   :  { %743 = vxpose.xlu0.b32.start [1/4] (short) (narrow) %v653_v9, 16 }
 0x3f1   :  { %v682_v13 = vpop.f32.mrf.mxu3 }
 0x3f2   :  { %744 = vxpose.xlu0.b32.cont [2/4] (short) (narrow) %v682_v13, 16 }
 0x409   :  { %v711_v4 = vpop.f32.mrf.mxu2 }
 0x40a   :  { %745 = vxpose.xlu0.b32.cont [3/4] (short) (narrow) %v711_v4, 16 }
 0x415   :  { %v740_v1 = vpop.f32.mrf.mxu3 }
 0x416   :  { %746 = vxpose.xlu0.b32.end [4/4] (short) (narrow) %v740_v1, 16 }
 0x4a2   :  { %v759_v3 = vpop.trf.xlu0 }
 0x4a3   :  { %979 = vmatmul.msk.f32.vlgmr.msrb.gmra.mxu1 %vm35_vm0, %v759_v3 }
 0x4aa   :  { %v760_v7 = vpop.trf.xlu0 }
 0x4ab   :  { %980 = vmatmul.msk.f32.gmra.mxu1 %vm35_vm0, %v760_v7 }
 0x520   :  { %v802_v8 = vpop.f32.mrf.mxu1 }
 0x521   :  { %v1305_v10 = vadd.f32 %v802_v8, %v1123_v2  ;;  %v853_v2 = vld [vmem:[%s1373_s5 + $0x18] sm:$0xff] }
 0x522   :  { %872 = vmatpush.msra.mxu2 %v853_v2 }
 0x523   :  { %v811_v11 = vmul.f32 %v1305_v10, %v1305_v10 }
 0x524   :  { %873 = vmatpush.msra.mxu2 %v852_v21 }
 0x525   :  { %v813_v14 = vsel %vm35_vm0, %v811_v11, 0.0 }
 0x526   :  { %814 = vadd.xlane.f32.xlu1 %v813_v14 }
 0x528   :  { %v805_v17 = vpop.f32.mrf.mxu1 }
 0x529   :  { %v1311_v18 = vadd.f32 %v805_v17, %v1116_v0  ;;  %v851_v0 = vld [vmem:[%s1373_s5 + $0x8] sm:$0xff] }
 0x52a   :  { %874 = vmatpush.msra.mxu2 %v851_v0 }
 0x52b   :  { %v812_v19 = vmul.f32 %v1311_v18, %v1311_v18 }
 0x52c   :  { %875 = vmatpush.msra.mxu2 %v850_v22 }
 0x52d   :  { %v816_v20 = vsel %vm35_vm0, %v812_v19, 0.0 }
 0x52e   :  { %817 = vadd.xlane.f32.xlu1 %v816_v20 }
 0x599   :  { %v815_v55 = vpop.xlane.xlu1 %814 }
 0x59a   :  { %v819_v23 = vmul.f32 %v815_v55, %v1129_v12 }
 0x59c   :  { %v821_v24 = vadd.f32 1e-06, %v819_v23 }
 0x59e   :  { %1034 = vrsqrt.f32 %v821_v24  ;;  %vm829_vm14 = vweird.f32 %v821_v24 }
 0x5a1   :  { %v818_v28 = vpop.xlane.xlu1 %817 }
 0x5a2   :  { %v820_v5 = vmul.f32 %v818_v28, %v1129_v12 }
 0x5a4   :  { %v1035_v30 = vpop.eup %1034  ;;  %v822_v31 = vadd.f32 1e-06, %v820_v5 }
 0x5a5   :  { %v824_v33 = vmul.f32 %v1035_v30, %v821_v24  ;;  %vm830_vm9 = vweird.f32 %v1035_v30 }
 0x5a6   :  { %1036 = vrsqrt.f32 %v822_v31  ;;  %vm831_vm15 = vmor %vm829_vm14, %vm830_vm9  ;;  %vm839_vm2 = vweird.f32 %v822_v31 }
 0x5a7   :  { %v825_v34 = vmul.f32 %v1035_v30, %v824_v33 }
 0x5a9   :  { %v826_v35 = vmul.f32 0.5, %v825_v34 }
 0x5ab   :  { %v827_v36 = vsub.f32 1.5, %v826_v35 }
 0x5ac   :  { %v1037_v12 = vpop.eup %1036 }
 0x5ad   :  { %v828_v37 = vmul.f32 %v1035_v30, %v827_v36  ;;  %v834_v38 = vmul.f32 %v1037_v12, %v822_v31  ;;  %vm840_vm1 = vweird.f32 %v1037_v12 }
 0x5ae   :  { %vm841_vm3 = vmor %vm839_vm2, %vm840_vm1 }
 0x5af   :  { %v832_v41 = vsel %vm831_vm15, %v1035_v30, %v828_v37  ;;  %v835_v42 = vmul.f32 %v1037_v12, %v834_v38 }
 0x5b0   :  { %v843_v44 = vmul.f32 %v832_v41, %v1305_v10 }
 0x5b1   :  { %v836_v45 = vmul.f32 0.5, %v835_v42 }
 0x5b2   :  { %v848_v46 = vmul.f32 %v995_v39, %v843_v44 }
 0x5b3   :  { %v837_v47 = vsub.f32 1.5, %v836_v45 }
 0x5b4   :  { %981 = vmatmul.msk.f32.vlgmr.msra.gmra.mxu2 %vm35_vm0, %v848_v46 }
 0x5b5   :  { %v838_v48 = vmul.f32 %v1037_v12, %v837_v47 }
 0x5b7   :  { %v842_v49 = vsel %vm841_vm3, %v1037_v12, %v838_v48 }
 0x5b8   :  { %v844_v51 = vmul.f32 %v842_v49, %v1311_v18 }
 0x5ba   :  { %v849_v52 = vmul.f32 %v995_v39, %v844_v51 }
 0x5bc   :  { %982 = vmatmul.msk.f32.gmra.mxu2 %vm35_vm0, %v849_v52 }
 0x637   :  { %v877_v54 = vpop.f32.mrf.mxu2 }
 0x638   :  { %v883_v43 = vmax.f32 %v877_v54, 0.0 }
 0x63a   :  { %983 = vmatmul.msk.f32.vlgmr.msrb.gmra.mxu3 %vm893_vm4, %v883_v43 }
 0x63f   :  { %v880_v56 = vpop.f32.mrf.mxu2 }
 0x640   :  { %v884_v57 = vmax.f32 %v880_v56, 0.0 }
 0x642   :  { %984 = vmatmul.msk.f32.gmra.mxu3 %vm893_vm4, %v884_v57 }
 0x6bd   :  { %v917_v59 = vpop.f32.mrf.mxu3 }
 0x6be   :  { %v923_v58 = vadd.f32 %v917_v59, %v1305_v10 }
 0x6c0   :  { %925 = vst.msk [vmem:[#allocation2] sm:$0xff] %vm35_vm0, %v923_v58 }
 0x6c5   :  { %v920_v60 = vpop.f32.mrf.mxu3 }
 0x6c6   :  { %v924_v40 = vadd.f32 %v920_v60, %v1311_v18 }
 0x6c8   :  { %926 = vst.msk [vmem:[#allocation2 + $0x8] sm:$0xff] %vm35_vm0, %v924_v40 }
 0x6c9   :  { %939 = dma.vmem_to_hbm [thread:$0]  %s932_s17, 256, %s934_s19, [#allocation3], %s1066_s6, %s1066_s6, %s1067_s20  }
 0x6ca   :  { %1062 = dma.done.wait [#allocation3], 256  }
 0x6cb   :  { %1063 = vsyncadd [#allocation3], 4294967040 }
 0x6cc   :  { %944 = vsyncpa [#allocation3], 1 }

</bundles_post_ra>
